<compile_context>
chip_gen: v6e
topology: v6e:2x2x1
jax: 0.10.0
libtpu: 0.0.40
codegen_flags: <defaults>
</compile_context>

<pallas_src>
import functools
import math

import jax
import jax.numpy as jnp
from jax.experimental import pallas as pl
from jax.experimental.pallas import tpu as pltpu

EPSILON = 1e-6      # matches the module's custom eps: nn.BatchNorm1d(..., eps=EPSILON)
SUBLANE = 8


def _round_up(n, m):
    return ((n + m - 1) // m) * m


def _make_kernel(dim, layer_dims, w_offsets):
    """Kernel over refs: [x, packed_params, out]; TB instances per grid step.

    x_ref:   (TB, batch, dim)
    p_ref:   (TB, n_rows, max_c) packed parameter slab
             rows 0..1:            input-BN gamma / beta            (cols :dim)
             rows 2+2l, 3+2l:      layer-l BN gamma / beta          (cols :cout_l)
             rows w_offsets[l]..+cin_l: layer-l weight (cin, cout)  (cols :cout_l)
    out_ref: (TB, batch, cout_last)
    """
    num_layers = len(layer_dims)

    def _bn(h, gamma, beta):
        # Training-mode BatchNorm1d over the batch axis (axis=1), per instance.
        # Two-pass centered variance (robust), fused into one scale/shift.
        mean = jnp.mean(h, axis=1, keepdims=True)
        hc = h - mean
        var = jnp.mean(hc * hc, axis=1, keepdims=True)
        scale = gamma * jax.lax.rsqrt(var + EPSILON)     # rsqrt -> EUP (free slot)
        return hc * scale + beta

    def kernel(x_ref, p_ref, out_ref):
        p = p_ref[...]                        # (TB, n_rows, max_c)
        h = x_ref[...].astype(jnp.float32)    # (TB, batch, dim)

        # Input BatchNorm1d(config.dim)
        h = _bn(h, p[:, 0:1, :dim], p[:, 1:2, :dim])

        for l, (cin, cout) in enumerate(layer_dims):
            off = w_offsets[l]
            w = p[:, off:off + cin, :cout]    # (TB, cin, cout), sublane-aligned slice
            # Batched Linear on the MXU; bias omitted (cancelled exactly by the
            # training-mode BN below).
            h = jnp.einsum("tbc,tcd->tbd", h, w, preferred_element_type=jnp.float32)
            h = _bn(h, p[:, 2 + 2 * l:3 + 2 * l, :cout],
                    p[:, 3 + 2 * l:4 + 2 * l, :cout])
            if l < num_layers - 1:            # activate=False on the last Dense
                h = jnp.tanh(h)

        out_ref[...] = h.astype(out_ref.dtype)

    return kernel


@functools.partial(jax.jit, static_argnames=())
def subnetwork_grad_forward(x, bn0_gamma, bn0_beta, layer_params):
    """Stacked Subnetwork_grad forward for T instances in a single pallas_call.

    x:          (T, batch, dim)
    bn0_gamma:  (T, dim)   bn0_beta: (T, dim)
    layer_params: list over Dense layers of
        (w (T, cin, cout), gamma (T, cout), beta (T, cout))
      with w already transposed to (cin, cout) relative to PyTorch's (cout, cin).
      The Linear bias is intentionally not an input: training-mode BatchNorm
      cancels any per-feature constant bias exactly.

    Returns float32 (T, batch, cout_last).
    """
    T, batch, dim = x.shape
    num_layers = len(layer_params)
    layer_dims = [(int(w.shape[1]), int(w.shape[2])) for (w, _, _) in layer_params]
    cout_last = layer_dims[-1][1]

    # ---- pack every per-instance parameter into one lane-slab (one DMA / block) ----
    max_c = max([dim] + [c for (_, c) in layer_dims])
    bn_rows = 2 + 2 * num_layers
    off = _round_up(bn_rows, SUBLANE)
    w_offsets = []
    for (cin, _) in layer_dims:
        w_offsets.append(off)
        off = _round_up(off + cin, SUBLANE)   # keep weight slices sublane-aligned
    n_rows = off

    packed = jnp.zeros((T, n_rows, max_c), jnp.float32)
    packed = packed.at[:, 0, :dim].set(bn0_gamma.astype(jnp.float32))
    packed = packed.at[:, 1, :dim].set(bn0_beta.astype(jnp.float32))
    for l, (w, g, b) in enumerate(layer_params):
        cin, cout = layer_dims[l]
        packed = packed.at[:, 2 + 2 * l, :cout].set(g.astype(jnp.float32))
        packed = packed.at[:, 3 + 2 * l, :cout].set(b.astype(jnp.float32))
        packed = packed.at[:, w_offsets[l]:w_offsets[l] + cin, :cout].set(
            w.astype(jnp.float32))

    # ---- grid: 2 parallel blocks so both v7x TensorCores get work; 1 if T is odd ----
    num_blocks = 2 if (T >= 2 and T % 2 == 0) else 1
    tb = T // num_blocks

    out = pl.pallas_call(
        _make_kernel(dim, layer_dims, w_offsets),
        out_shape=jax.ShapeDtypeStruct((T, batch, cout_last), jnp.float32),
        grid=(num_blocks,),
        in_specs=[
            pl.BlockSpec((tb, batch, dim), lambda t: (t, 0, 0)),
            pl.BlockSpec((tb, n_rows, max_c), lambda t: (t, 0, 0)),
        ],
        out_specs=pl.BlockSpec((tb, batch, cout_last), lambda t: (t, 0, 0)),
        compiler_params=pltpu.CompilerParams(
            dimension_semantics=("parallel",),
        ),
    )(x, packed)
    return out


# ----------------------- pure-JAX reference (PyTorch-faithful) -----------------------

def _bn_ref(h, gamma, beta):
    """Training-mode BatchNorm1d over the batch axis (axis=1), two-pass centered variance."""
    mean = jnp.mean(h, axis=1, keepdims=True)
    var = jnp.mean(jnp.square(h - mean), axis=1, keepdims=True)
    return (h - mean) * jax.lax.rsqrt(var + EPSILON) * gamma[:, None, :] + beta[:, None, :]


def _reference(x, bn0_gamma, bn0_beta, layer_params_with_bias):
    """Mirrors the PyTorch forward exactly, INCLUDING the Linear bias the kernel drops."""
    h = _bn_ref(x.astype(jnp.float32), bn0_gamma, bn0_beta)
    n = len(layer_params_with_bias)
    for l, (w, b, g, be) in enumerate(layer_params_with_bias):
        h = jnp.einsum("tbc,tcd->tbd", h, w) + b[:, None, :]
        h = _bn_ref(h, g, be)
        if l < n - 1:
            h = jnp.tanh(h)
    return h


if __name__ == "__main__":
    # config: dim = 8, num_hiddens = [8, 32, 32, 8]; T stacked time-step subnetworks.
    T = 8
    batch = 16
    dim = 8
    num_hiddens = [dim, 32, 32, dim]

    key = jax.random.PRNGKey(0)
    key, kx, kg0, kb0 = jax.random.split(key, 4)
    x = jax.random.normal(kx, (T, batch, dim), dtype=jnp.float32)

    # Input BatchNorm params (randomized so the packed-parameter path is exercised).
    bn0_gamma = 1.0 + 0.2 * jax.random.normal(kg0, (T, dim), dtype=jnp.float32)
    bn0_beta = 0.1 * jax.random.normal(kb0, (T, dim), dtype=jnp.float32)

    kernel_layer_params = []   # (w, gamma, beta)        -- fed to the Pallas kernel
    ref_layer_params = []      # (w, bias, gamma, beta)  -- fed to the PyTorch-faithful reference
    for i in range(1, len(num_hiddens)):
        cin, cout = num_hiddens[i - 1], num_hiddens[i]
        key, kw, kb, kg, kbe = jax.random.split(key, 5)
        std = 5.0 / math.sqrt(cin + cout)   # nn.init.normal_(weight, std=5/sqrt(cin+cout))
        w = std * jax.random.normal(kw, (T, cin, cout), dtype=jnp.float32)   # (cin, cout) layout
        bound = 1.0 / math.sqrt(cin)        # PyTorch Linear default bias init range
        bias = jax.random.uniform(kb, (T, cout), minval=-bound, maxval=bound, dtype=jnp.float32)
        gamma = 1.0 + 0.2 * jax.random.normal(kg, (T, cout), dtype=jnp.float32)
        beta = 0.1 * jax.random.normal(kbe, (T, cout), dtype=jnp.float32)
        kernel_layer_params.append((w, gamma, beta))
        ref_layer_params.append((w, bias, gamma, beta))

    out = subnetwork_grad_forward(x, bn0_gamma, bn0_beta, kernel_layer_params)
    out = jax.block_until_ready(out)

    ref = _reference(x, bn0_gamma, bn0_beta, ref_layer_params)
    assert out.shape == (T, batch, num_hiddens[-1])
    assert bool(jnp.allclose(out, ref, atol=1e-4, rtol=1e-4)), "Pallas kernel mismatch vs reference"

    print("KERNEL_OK")
</pallas_src>

<mosaic_0001>
module attributes {stable_mosaic.version = 11 : i64} {
  func.func @kernel(%arg0: i32, %arg1: memref<4x16x8xf32, #tpu.memory_space<vmem>>, %arg2: memref<4x80x32xf32, #tpu.memory_space<vmem>>, %arg3: memref<4x16x8xf32, #tpu.memory_space<vmem>>) attributes {dimension_semantics = [#tpu.dimension_semantics<parallel>], iteration_bounds = array<i64: 2>, scalar_prefetch = 0 : i64, scratch_operands = 0 : i64, tpu.core_type = #tpu.core_type<tc>, window_params = [{transform_indices = @transform_0, window_bounds = array<i64: 4, 16, 8>}, {transform_indices = @transform_1, window_bounds = array<i64: 4, 80, 32>}, {transform_indices = @transform_2, window_bounds = array<i64: 4, 16, 8>}]} {
    %c0 = arith.constant 0 : index
    %c0_0 = arith.constant 0 : index
    %c0_1 = arith.constant 0 : index
    %0 = vector.load %arg2[%c0, %c0_0, %c0_1] : memref<4x80x32xf32, #tpu.memory_space<vmem>>, vector<4x80x32xf32>
    %c0_2 = arith.constant 0 : index
    %c0_3 = arith.constant 0 : index
    %c0_4 = arith.constant 0 : index
    %1 = vector.load %arg1[%c0_2, %c0_3, %c0_4] : memref<4x16x8xf32, #tpu.memory_space<vmem>>, vector<4x16x8xf32>
    %2 = vector.extract_strided_slice %0 {offsets = [0, 0, 0], sizes = [4, 1, 8], strides = [1, 1, 1]} : vector<4x80x32xf32> to vector<4x1x8xf32>
    %3 = vector.extract_strided_slice %0 {offsets = [0, 1, 0], sizes = [4, 1, 8], strides = [1, 1, 1]} : vector<4x80x32xf32> to vector<4x1x8xf32>
    %cst = arith.constant dense<0.000000e+00> : vector<4x8xf32>
    %4 = vector.multi_reduction <add>, %1, %cst [1] : vector<4x16x8xf32> to vector<4x8xf32>
    %5 = vector.shape_cast %4 : vector<4x8xf32> to vector<4x1x8xf32>
    %cst_5 = arith.constant 1.600000e+01 : f32
    %6 = vector.broadcast %cst_5 : f32 to vector<4x1x8xf32>
    %7 = arith.divf %5, %6 : vector<4x1x8xf32>
    %8 = vector.broadcast %7 : vector<4x1x8xf32> to vector<4x16x8xf32>
    %9 = arith.subf %1, %8 : vector<4x16x8xf32>
    %10 = arith.mulf %9, %9 : vector<4x16x8xf32>
    %cst_6 = arith.constant dense<0.000000e+00> : vector<4x8xf32>
    %11 = vector.multi_reduction <add>, %10, %cst_6 [1] : vector<4x16x8xf32> to vector<4x8xf32>
    %12 = vector.shape_cast %11 : vector<4x8xf32> to vector<4x1x8xf32>
    %cst_7 = arith.constant 1.600000e+01 : f32
    %13 = vector.broadcast %cst_7 : f32 to vector<4x1x8xf32>
    %14 = arith.divf %12, %13 : vector<4x1x8xf32>
    %cst_8 = arith.constant 9.99999997E-7 : f32
    %15 = vector.broadcast %cst_8 : f32 to vector<4x1x8xf32>
    %16 = arith.addf %14, %15 : vector<4x1x8xf32>
    %17 = math.rsqrt %16 : vector<4x1x8xf32>
    %18 = arith.mulf %2, %17 : vector<4x1x8xf32>
    %19 = vector.broadcast %18 : vector<4x1x8xf32> to vector<4x16x8xf32>
    %20 = arith.mulf %9, %19 : vector<4x16x8xf32>
    %21 = vector.broadcast %3 : vector<4x1x8xf32> to vector<4x16x8xf32>
    %22 = arith.addf %20, %21 : vector<4x16x8xf32>
    %23 = vector.extract_strided_slice %0 {offsets = [0, 8, 0], sizes = [4, 8, 32], strides = [1, 1, 1]} : vector<4x80x32xf32> to vector<4x8x32xf32>
    "tpu.trace_start"() <{level = 10 : i32, message = "tbc,tcd->tbd"}> : () -> ()
    %cst_9 = arith.constant dense<0.000000e+00> : vector<4x16x32xf32>
    %24 = tpu.matmul %22, %23, %cst_9 {dimension_numbers = #tpu.dot_dimension_numbers<[2], [1], [1], [2], [0, 0, 0, 1, 1, 2], [0], [0]>} : vector<4x16x8xf32>, vector<4x8x32xf32>, vector<4x16x32xf32> -> vector<4x16x32xf32>
    "tpu.trace_stop"() : () -> ()
    %25 = vector.extract_strided_slice %0 {offsets = [0, 2, 0], sizes = [4, 1, 32], strides = [1, 1, 1]} : vector<4x80x32xf32> to vector<4x1x32xf32>
    %26 = vector.extract_strided_slice %0 {offsets = [0, 3, 0], sizes = [4, 1, 32], strides = [1, 1, 1]} : vector<4x80x32xf32> to vector<4x1x32xf32>
    %cst_10 = arith.constant dense<0.000000e+00> : vector<4x32xf32>
    %27 = vector.multi_reduction <add>, %24, %cst_10 [1] : vector<4x16x32xf32> to vector<4x32xf32>
    %28 = vector.shape_cast %27 : vector<4x32xf32> to vector<4x1x32xf32>
    %cst_11 = arith.constant 1.600000e+01 : f32
    %29 = vector.broadcast %cst_11 : f32 to vector<4x1x32xf32>
    %30 = arith.divf %28, %29 : vector<4x1x32xf32>
    %31 = vector.broadcast %30 : vector<4x1x32xf32> to vector<4x16x32xf32>
    %32 = arith.subf %24, %31 : vector<4x16x32xf32>
    %33 = arith.mulf %32, %32 : vector<4x16x32xf32>
    %cst_12 = arith.constant dense<0.000000e+00> : vector<4x32xf32>
    %34 = vector.multi_reduction <add>, %33, %cst_12 [1] : vector<4x16x32xf32> to vector<4x32xf32>
    %35 = vector.shape_cast %34 : vector<4x32xf32> to vector<4x1x32xf32>
    %cst_13 = arith.constant 1.600000e+01 : f32
    %36 = vector.broadcast %cst_13 : f32 to vector<4x1x32xf32>
    %37 = arith.divf %35, %36 : vector<4x1x32xf32>
    %cst_14 = arith.constant 9.99999997E-7 : f32
    %38 = vector.broadcast %cst_14 : f32 to vector<4x1x32xf32>
    %39 = arith.addf %37, %38 : vector<4x1x32xf32>
    %40 = math.rsqrt %39 : vector<4x1x32xf32>
    %41 = arith.mulf %25, %40 : vector<4x1x32xf32>
    %42 = vector.broadcast %41 : vector<4x1x32xf32> to vector<4x16x32xf32>
    %43 = arith.mulf %32, %42 : vector<4x16x32xf32>
    %44 = vector.broadcast %26 : vector<4x1x32xf32> to vector<4x16x32xf32>
    %45 = arith.addf %43, %44 : vector<4x16x32xf32>
    %46 = math.tanh %45 : vector<4x16x32xf32>
    %47 = vector.extract_strided_slice %0 {offsets = [0, 16, 0], sizes = [4, 32, 32], strides = [1, 1, 1]} : vector<4x80x32xf32> to vector<4x32x32xf32>
    "tpu.trace_start"() <{level = 10 : i32, message = "tbc,tcd->tbd"}> : () -> ()
    %cst_15 = arith.constant dense<0.000000e+00> : vector<4x16x32xf32>
    %48 = tpu.matmul %46, %47, %cst_15 {dimension_numbers = #tpu.dot_dimension_numbers<[2], [1], [1], [2], [0, 0, 0, 1, 1, 2], [0], [0]>} : vector<4x16x32xf32>, vector<4x32x32xf32>, vector<4x16x32xf32> -> vector<4x16x32xf32>
    "tpu.trace_stop"() : () -> ()
    %49 = vector.extract_strided_slice %0 {offsets = [0, 4, 0], sizes = [4, 1, 32], strides = [1, 1, 1]} : vector<4x80x32xf32> to vector<4x1x32xf32>
    %50 = vector.extract_strided_slice %0 {offsets = [0, 5, 0], sizes = [4, 1, 32], strides = [1, 1, 1]} : vector<4x80x32xf32> to vector<4x1x32xf32>
    %cst_16 = arith.constant dense<0.000000e+00> : vector<4x32xf32>
    %51 = vector.multi_reduction <add>, %48, %cst_16 [1] : vector<4x16x32xf32> to vector<4x32xf32>
    %52 = vector.shape_cast %51 : vector<4x32xf32> to vector<4x1x32xf32>
    %cst_17 = arith.constant 1.600000e+01 : f32
    %53 = vector.broadcast %cst_17 : f32 to vector<4x1x32xf32>
    %54 = arith.divf %52, %53 : vector<4x1x32xf32>
    %55 = vector.broadcast %54 : vector<4x1x32xf32> to vector<4x16x32xf32>
    %56 = arith.subf %48, %55 : vector<4x16x32xf32>
    %57 = arith.mulf %56, %56 : vector<4x16x32xf32>
    %cst_18 = arith.constant dense<0.000000e+00> : vector<4x32xf32>
    %58 = vector.multi_reduction <add>, %57, %cst_18 [1] : vector<4x16x32xf32> to vector<4x32xf32>
    %59 = vector.shape_cast %58 : vector<4x32xf32> to vector<4x1x32xf32>
    %cst_19 = arith.constant 1.600000e+01 : f32
    %60 = vector.broadcast %cst_19 : f32 to vector<4x1x32xf32>
    %61 = arith.divf %59, %60 : vector<4x1x32xf32>
    %cst_20 = arith.constant 9.99999997E-7 : f32
    %62 = vector.broadcast %cst_20 : f32 to vector<4x1x32xf32>
    %63 = arith.addf %61, %62 : vector<4x1x32xf32>
    %64 = math.rsqrt %63 : vector<4x1x32xf32>
    %65 = arith.mulf %49, %64 : vector<4x1x32xf32>
    %66 = vector.broadcast %65 : vector<4x1x32xf32> to vector<4x16x32xf32>
    %67 = arith.mulf %56, %66 : vector<4x16x32xf32>
    %68 = vector.broadcast %50 : vector<4x1x32xf32> to vector<4x16x32xf32>
    %69 = arith.addf %67, %68 : vector<4x16x32xf32>
    %70 = math.tanh %69 : vector<4x16x32xf32>
    %71 = vector.extract_strided_slice %0 {offsets = [0, 48, 0], sizes = [4, 32, 8], strides = [1, 1, 1]} : vector<4x80x32xf32> to vector<4x32x8xf32>
    "tpu.trace_start"() <{level = 10 : i32, message = "tbc,tcd->tbd"}> : () -> ()
    %cst_21 = arith.constant dense<0.000000e+00> : vector<4x16x8xf32>
    %72 = tpu.matmul %70, %71, %cst_21 {dimension_numbers = #tpu.dot_dimension_numbers<[2], [1], [1], [2], [0, 0, 0, 1, 1, 2], [0], [0]>} : vector<4x16x32xf32>, vector<4x32x8xf32>, vector<4x16x8xf32> -> vector<4x16x8xf32>
    "tpu.trace_stop"() : () -> ()
    %73 = vector.extract_strided_slice %0 {offsets = [0, 6, 0], sizes = [4, 1, 8], strides = [1, 1, 1]} : vector<4x80x32xf32> to vector<4x1x8xf32>
    %74 = vector.extract_strided_slice %0 {offsets = [0, 7, 0], sizes = [4, 1, 8], strides = [1, 1, 1]} : vector<4x80x32xf32> to vector<4x1x8xf32>
    %cst_22 = arith.constant dense<0.000000e+00> : vector<4x8xf32>
    %75 = vector.multi_reduction <add>, %72, %cst_22 [1] : vector<4x16x8xf32> to vector<4x8xf32>
    %76 = vector.shape_cast %75 : vector<4x8xf32> to vector<4x1x8xf32>
    %cst_23 = arith.constant 1.600000e+01 : f32
    %77 = vector.broadcast %cst_23 : f32 to vector<4x1x8xf32>
    %78 = arith.divf %76, %77 : vector<4x1x8xf32>
    %79 = vector.broadcast %78 : vector<4x1x8xf32> to vector<4x16x8xf32>
    %80 = arith.subf %72, %79 : vector<4x16x8xf32>
    %81 = arith.mulf %80, %80 : vector<4x16x8xf32>
    %cst_24 = arith.constant dense<0.000000e+00> : vector<4x8xf32>
    %82 = vector.multi_reduction <add>, %81, %cst_24 [1] : vector<4x16x8xf32> to vector<4x8xf32>
    %83 = vector.shape_cast %82 : vector<4x8xf32> to vector<4x1x8xf32>
    %cst_25 = arith.constant 1.600000e+01 : f32
    %84 = vector.broadcast %cst_25 : f32 to vector<4x1x8xf32>
    %85 = arith.divf %83, %84 : vector<4x1x8xf32>
    %cst_26 = arith.constant 9.99999997E-7 : f32
    %86 = vector.broadcast %cst_26 : f32 to vector<4x1x8xf32>
    %87 = arith.addf %85, %86 : vector<4x1x8xf32>
    %88 = math.rsqrt %87 : vector<4x1x8xf32>
    %89 = arith.mulf %73, %88 : vector<4x1x8xf32>
    %90 = vector.broadcast %89 : vector<4x1x8xf32> to vector<4x16x8xf32>
    %91 = arith.mulf %80, %90 : vector<4x16x8xf32>
    %92 = vector.broadcast %74 : vector<4x1x8xf32> to vector<4x16x8xf32>
    %93 = arith.addf %91, %92 : vector<4x16x8xf32>
    %c0_27 = arith.constant 0 : index
    %c0_28 = arith.constant 0 : index
    %c0_29 = arith.constant 0 : index
    %94 = vector.load %arg3[%c0_27, %c0_28, %c0_29] : memref<4x16x8xf32, #tpu.memory_space<vmem>>, vector<4x16x8xf32>
    tpu.vector_store %arg3[%c0_27, %c0_28, %c0_29], %93 {strides = array<i32>} : memref<4x16x8xf32, #tpu.memory_space<vmem>>, vector<4x16x8xf32>,
    return
  }
  func.func @transform_0(%arg0: i32) -> (i32, i32, i32) {
    %c0_i32 = arith.constant 0 : i32
    %c0_i32_0 = arith.constant 0 : i32
    %c0_i32_1 = arith.constant 0 : i32
    return %arg0, %c0_i32, %c0_i32_0 : i32, i32, i32
  }
  func.func @transform_1(%arg0: i32) -> (i32, i32, i32) {
    %c0_i32 = arith.constant 0 : i32
    %c0_i32_0 = arith.constant 0 : i32
    %c0_i32_1 = arith.constant 0 : i32
    return %arg0, %c0_i32, %c0_i32_0 : i32, i32, i32
  }
  func.func @transform_2(%arg0: i32) -> (i32, i32, i32) {
    %c0_i32 = arith.constant 0 : i32
    %c0_i32_0 = arith.constant 0 : i32
    %c0_i32_1 = arith.constant 0 : i32
    return %arg0, %c0_i32, %c0_i32_0 : i32, i32, i32
  }
}

</mosaic_0001>

<bundles_post_ra>
// kernel: subnetwork_grad_forward.1
= control target key start
LH: loop header
LB: loop body
LE: loop exit
PB: predicated region body
PF: predicated region fallthrough
CT: control target
= control target key end

     0   :  { %s2227_s9 = smov 0   ;;  %s2633_s0 = inlined_call_operand.vmem [shape: f32[8,16,8], index: 0, kind: input, shape index: {}]   ;;  %s2634_s1 = inlined_call_operand.vmem [shape: f32[8,80,32], index: 1, kind: input, shape index: {}]   ;;  %s2635_s2 = inlined_call_operand.vmem [shape: f32[8,16,8], index: 2, kind: output, shape index: {}]  }
   0x1 LB: > { %s1918_s10 = sadd.s32 4294967295, %s2210_s9   ;;  %p1922_p0 = scmp.ge.s32.totalorder %s2210_s9, 1  ;;  %s2210_s9 = sphi %s2227_s9, %s12_s9  }
   0x2   : > { %p126_p1 = scmp.lt.s32.totalorder %s2210_s9, 3 }
   0x4   : > { %p127_p2 = pnand %p1922_p0, %p126_p1 }
   0x5   : > { %s1923_s11 = sshll.u32 (!%p127_p2), %s1918_s10, 2 }
   0x6   : > { %130 = sbr.rel (%p127_p2) target bundleno = 894 (0x37e), region = 28  ;;  %p157_p3 = scmp.lt.s32.totalorder (!%p127_p2), %s1923_s11, 7 }
   0xb   : > { %s2637_s11 = smov (!%p157_p3, %s1923_s11), 7  ;;  %vm225_vm0 = vcmask 64512   ;;  %vm707_vm1 = vcmask 261120  }
   0xc   : > { %s2127_s12 = smul.u32 80, %s2637_s11  ;;  %s1957_s13 = sshll.u32 %s2637_s11, 4 }
   0xd   : > { %s161_s16 = scalar_lea.vmem %s2633_s0, %s1957_s13  ;;  %s2604_s22 = scalar_lea.vmem %s2635_s2, %s1957_s13 }
   0xe   : > { %s2247_s19 = scalar_lea.vmem %s2634_s1, %s2127_s12  ;;  %v217_v0 = vld [vmem:[%s161_s16] sm:$0xff]  ;;  %v218_v1 = vld [vmem:[%s161_s16 + $0x8] sm:$0xff]  ;;  %v219_v2 = vld [vmem:[%s161_s16 + $0x10] sm:$0xff] }
   0xf   : > { %v178_v3 = vld [vmem:[%s2247_s19 + $0x8] sm:$0xff]  ;;  %v188_v4 = vld [vmem:[%s2247_s19 + $0x58] sm:$0xff]  ;;  %v226_v5 = vsel %vm225_vm0, %v217_v0, 0.0  ;;  %v227_v6 = vsel %vm225_vm0, %v218_v1, 0.0  ;;  %v235_v7 = vsel %vm225_vm0, %v219_v2, 0.0  ;;  %v221_v13 = vld [vmem:[%s161_s16 + $0x20] sm:$0xff] }
  0x10   : > { %2019 = vmatprep.subr.mxu0 %v178_v3  ;;  %2024 = vmatprep.subr.mxu1 %v188_v4  ;;  %v228_v8 = vadd.f32 %v227_v6, %v226_v5  ;;  %v220_v9 = vld [vmem:[%s161_s16 + $0x18] sm:$0xff]  ;;  %v2255_v10 = vld [vmem:[%s2247_s19 + $0xa8] sm:$0xff]  ;;  %v244_v17 = vsel %vm225_vm0, %v221_v13, 0.0  ;;  %v223_v18 = vld [vmem:[%s161_s16 + $0x30] sm:$0xff] }
  0x11   : > { %2020 = vmatpush3.msra.mxu0 %v178_v3  ;;  %2025 = vmatpush3.msra.mxu1 %v188_v4  ;;  %v236_v11 = vsel %vm225_vm0, %v220_v9, 0.0  ;;  %v2259_v12 = vld [vmem:[%s2247_s19 + $0xf8] sm:$0xff]  ;;  %v222_v16 = vld [vmem:[%s161_s16 + $0x28] sm:$0xff]  ;;  %v253_v21 = vsel %vm225_vm0, %v223_v18, 0.0 }
  0x12   : > { %v229_v14 = vrot.slane %v228_v8, 4  ;;  %v237_v15 = vadd.f32 %v236_v11, %v235_v7  ;;  %2029 = vmatprep.subr.mxu0 %v2255_v10  ;;  %2034 = vmatprep.subr.mxu1 %v2259_v12  ;;  %v245_v19 = vsel %vm225_vm0, %v222_v16, 0.0  ;;  %v224_v20 = vld [vmem:[%s161_s16 + $0x38] sm:$0xff] }
  0x13   : > { %v246_v24 = vadd.f32 %v245_v19, %v244_v17  ;;  %v254_v25 = vsel %vm225_vm0, %v224_v20, 0.0 }
  0x14   : > { %v230_v22 = vadd.f32 %v229_v14, %v228_v8  ;;  %v238_v23 = vrot.slane %v237_v15, 4  ;;  %v255_v26 = vadd.f32 %v254_v25, %v253_v21 }
  0x15   : > { %v247_v29 = vrot.slane %v246_v24, 4 }
  0x16   : > { %v231_v27 = vrot.slane %v230_v22, 2  ;;  %v239_v28 = vadd.f32 %v238_v23, %v237_v15  ;;  %v256_v30 = vrot.slane %v255_v26, 4 }
  0x17   : > { %v248_v33 = vadd.f32 %v247_v29, %v246_v24 }
  0x18   : > { %v232_v31 = vadd.f32 %v231_v27, %v230_v22  ;;  %v240_v32 = vrot.slane %v239_v28, 2  ;;  %v257_v34 = vadd.f32 %v256_v30, %v255_v26 }
  0x19   : > { %v249_v37 = vrot.slane %v248_v33, 2 }
  0x1a   : > { %v233_v35 = vrot.slane %v232_v31, 1  ;;  %v241_v36 = vadd.f32 %v240_v32, %v239_v28  ;;  %v258_v38 = vrot.slane %v257_v34, 2 }
  0x1b   : > { %v250_v41 = vadd.f32 %v249_v37, %v248_v33 }
  0x1c   : > { %v234_v39 = vadd.f32 %v233_v35, %v232_v31  ;;  %v242_v40 = vrot.slane %v241_v36, 1  ;;  %v259_v42 = vadd.f32 %v258_v38, %v257_v34 }
  0x1d   : > { %v251_v45 = vrot.slane %v250_v41, 1 }
  0x1e   : > { %v263_v43 = vmul.f32 0.0625, %v234_v39  ;;  %v243_v44 = vadd.f32 %v242_v40, %v241_v36  ;;  %v260_v46 = vrot.slane %v259_v42, 1 }
  0x1f   : > { %v252_v50 = vadd.f32 %v251_v45, %v250_v41 }
  0x20   : > { %v2267_v47 = vsub.f32 %v217_v0, %v263_v43  ;;  %v2269_v48 = vsub.f32 %v218_v1, %v263_v43  ;;  %v264_v49 = vmul.f32 0.0625, %v243_v44  ;;  %v261_v51 = vadd.f32 %v260_v46, %v259_v42 }
  0x21   : > { %v265_v56 = vmul.f32 0.0625, %v252_v50 }
  0x22   : > { %v275_v52 = vmul.f32 %v2267_v47, %v2267_v47  ;;  %v276_v53 = vmul.f32 %v2269_v48, %v2269_v48  ;;  %v2275_v54 = vsub.f32 %v219_v2, %v264_v49  ;;  %v2277_v55 = vsub.f32 %v220_v9, %v264_v49 }
  0x23   : > { %v266_v57 = vmul.f32 0.0625, %v261_v51  ;;  %v2285_v63 = vsub.f32 %v221_v13, %v265_v56  ;;  %v2287_v0 = vsub.f32 %v222_v16, %v265_v56  ;;  %v335_v51 = vlaneseq  ;;  %v2310_v56 = vld [vmem:[%s2247_s19] sm:$0xff] }
  0x24   : > { %v283_v58 = vsel %vm225_vm0, %v275_v52, 0.0  ;;  %v284_v59 = vsel %vm225_vm0, %v276_v53, 0.0  ;;  %v277_v60 = vmul.f32 %v2275_v54, %v2275_v54  ;;  %v278_v61 = vmul.f32 %v2277_v55, %v2277_v55 }
  0x25   : > { %v285_v62 = vadd.f32 %v284_v59, %v283_v58  ;;  %v2289_v1 = vsub.f32 %v223_v18, %v266_v57  ;;  %v2293_v4 = vsub.f32 %v224_v20, %v266_v57  ;;  %v279_v7 = vmul.f32 %v2285_v63, %v2285_v63 }
  0x26   : > { %v292_v2 = vsel %vm225_vm0, %v277_v60, 0.0  ;;  %v293_v3 = vsel %vm225_vm0, %v278_v61, 0.0  ;;  %v280_v8 = vmul.f32 %v2287_v0, %v2287_v0  ;;  %v2307_v53 = vshrl.u32 %v335_v51, 7  ;;  %v2315_v60 = vld [vmem:[%s2247_s19 + $0x50] sm:$0xff] }
  0x27   : > { %v286_v5 = vrot.slane %v285_v62, 4  ;;  %v294_v6 = vadd.f32 %v293_v3, %v292_v2  ;;  %v281_v9 = vmul.f32 %v2289_v1, %v2289_v1  ;;  %v282_v11 = vmul.f32 %v2293_v4, %v2293_v4 }
  0x28   : > { %v301_v15 = vsel %vm225_vm0, %v279_v7, 0.0  ;;  %v302_v16 = vsel %vm225_vm0, %v280_v8, 0.0  ;;  %v337_v57 = vsub.s32 0, %v2307_v53  ;;  %v361_v58 = vsub.s32 1, %v2307_v53 }
  0x29   : > { %v287_v13 = vadd.f32 %v286_v5, %v285_v62  ;;  %v295_v14 = vrot.slane %v294_v6, 4  ;;  %v303_v17 = vadd.f32 %v302_v16, %v301_v15  ;;  %v310_v18 = vsel %vm225_vm0, %v281_v9, 0.0 }
  0x2a   : > { %v311_v19 = vsel %vm225_vm0, %v282_v11, 0.0  ;;  %v362_v3 = vrot.slane %v2310_v56, %v361_v58 }
  0x2b   : > { %v288_v20 = vrot.slane %v287_v13, 2  ;;  %v296_v21 = vadd.f32 %v295_v14, %v294_v6  ;;  %v312_v22 = vadd.f32 %v311_v19, %v310_v18  ;;  %v304_v23 = vrot.slane %v303_v17, 4  ;;  %v2321_v6 = vld [vmem:[%s2247_s19 + $0xa0] sm:$0xff]  ;;  %v2327_v14 = vld [vmem:[%s2247_s19 + $0xf0] sm:$0xff] }
  0x2d   : > { %v289_v24 = vadd.f32 %v288_v20, %v287_v13  ;;  %v297_v25 = vrot.slane %v296_v21, 2  ;;  %v313_v26 = vrot.slane %v312_v22, 4  ;;  %v305_v27 = vadd.f32 %v304_v23, %v303_v17 }
  0x2e   : > { %v366_v13 = vrot.slane %v2315_v60, %v361_v58 }
  0x2f   : > { %v290_v28 = vrot.slane %v289_v24, 1  ;;  %v298_v29 = vadd.f32 %v297_v25, %v296_v21  ;;  %v314_v30 = vadd.f32 %v313_v26, %v312_v22  ;;  %v306_v31 = vrot.slane %v305_v27, 2 }
  0x30   : > { %v370_v22 = vrot.slane %v2321_v6, %v361_v58 }
  0x31   : > { %v291_v32 = vadd.f32 %v290_v28, %v289_v24  ;;  %v299_v33 = vrot.slane %v298_v29, 1  ;;  %v315_v34 = vrot.slane %v314_v30, 2  ;;  %v307_v35 = vadd.f32 %v306_v31, %v305_v27  ;;  %v190_v31 = vld [vmem:[%s2247_s19 + $0x68] sm:$0xff] }
  0x33   : > { %v319_v36 = vmul.f32 0.0625, %v291_v32  ;;  %v300_v37 = vadd.f32 %v299_v33, %v298_v29  ;;  %v316_v38 = vadd.f32 %v315_v34, %v314_v30  ;;  %v308_v39 = vrot.slane %v307_v35, 1  ;;  %v181_v30 = vld [vmem:[%s2247_s19 + $0x20] sm:$0xff]  ;;  %v179_v32 = vld [vmem:[%s2247_s19 + $0x10] sm:$0xff]  ;;  %v2358_v34 = vld [vmem:[%s2247_s19 + $0xc8] sm:$0xff] }
  0x34   : > { %v189_v33 = vld [vmem:[%s2247_s19 + $0x60] sm:$0xff] }
  0x35   : > { %v323_v40 = vadd.f32 1e-06, %v319_v36  ;;  %v320_v41 = vmul.f32 0.0625, %v300_v37  ;;  %v317_v42 = vrot.slane %v316_v38, 1  ;;  %v309_v43 = vadd.f32 %v308_v39, %v307_v35  ;;  %v2361_v35 = vld [vmem:[%s2247_s19 + $0x118] sm:$0xff] }
  0x37   : > { %2136 = vrsqrt.f32 %v323_v40  ;;  %v324_v44 = vadd.f32 1e-06, %v320_v41  ;;  %v318_v45 = vadd.f32 %v317_v42, %v316_v38  ;;  %v321_v46 = vmul.f32 0.0625, %v309_v43 }
  0x39   : > { %2138 = vrsqrt.f32 %v324_v44  ;;  %v322_v49 = vmul.f32 0.0625, %v318_v45  ;;  %v325_v50 = vadd.f32 1e-06, %v321_v46 }
  0x3b   : > { %v326_v52 = vadd.f32 1e-06, %v322_v49  ;;  %2140 = vrsqrt.f32 %v325_v50 }
  0x3d   : > { %2142 = vrsqrt.f32 %v326_v52 }
  0x44   : > { %v2137_v59 = vpop.eup %2136 }
  0x45   : > { %v331_v61 = vmul.f32 %v2137_v59, %v2310_v56 }
  0x46   : > { %v2139_v62 = vpop.eup %2138 }
  0x47   : > { %v338_v2 = vrot.slane %v331_v61, %v337_v57  ;;  %v332_v5 = vmul.f32 %v2139_v62, %v2315_v60 }
  0x48   : > { %v2141_v7 = vpop.eup %2140 }
  0x49   : > { %v351_v8 = vmul.f32 %v338_v2, %v2267_v47  ;;  %v352_v9 = vmul.f32 %v338_v2, %v2269_v48  ;;  %v342_v11 = vrot.slane %v332_v5, %v337_v57  ;;  %v333_v16 = vmul.f32 %v2141_v7, %v2321_v6 }
  0x4a   : > { %v2143_v15 = vpop.eup %2142 }
  0x4b   : > { %v375_v17 = vadd.f32 %v362_v3, %v351_v8  ;;  %v376_v18 = vadd.f32 %v362_v3, %v352_v9  ;;  %v353_v19 = vmul.f32 %v342_v11, %v2275_v54  ;;  %v354_v20 = vmul.f32 %v342_v11, %v2277_v55 }
  0x4c   : > { %v346_v21 = vrot.slane %v333_v16, %v337_v57  ;;  %v334_v47 = vmul.f32 %v2143_v15, %v2327_v14  ;;  %v374_v54 = vrot.slane %v2327_v14, %v361_v58 }
  0x4d   : > { %2021 = vmatprep.mubr.msk.f32.mxu0 %vm225_vm0, %v375_v17  ;;  %v377_v48 = vadd.f32 %v366_v13, %v353_v19  ;;  %v378_v23 = vadd.f32 %v366_v13, %v354_v20 }
  0x4e   : > { %2022 = vmatmul.mubr.msk.f32.vlgmr.msra.gmra.mxu0 %vm225_vm0, %v376_v18  ;;  %v355_v24 = vmul.f32 %v346_v21, %v2285_v63  ;;  %v356_v25 = vmul.f32 %v346_v21, %v2287_v0  ;;  %v350_v26 = vrot.slane %v334_v47, %v337_v57 }
  0x4f   : > { %2026 = vmatprep.mubr.msk.f32.mxu1 %vm225_vm0, %v377_v48  ;;  %2030 = vmatpush3.msra.mxu0 %v2255_v10  ;;  %v182_v10 = vld [vmem:[%s2247_s19 + $0x28] sm:$0xff] }
  0x50   : > { %2027 = vmatmul.mubr.msk.f32.vlgmr.msra.gmra.mxu1 %vm225_vm0, %v378_v23  ;;  %v379_v55 = vadd.f32 %v370_v22, %v355_v24  ;;  %v380_v27 = vadd.f32 %v370_v22, %v356_v25  ;;  %v357_v28 = vmul.f32 %v350_v26, %v2289_v1  ;;  %v358_v63 = vmul.f32 %v350_v26, %v2293_v4  ;;  %v192_v1 = vld [vmem:[%s2247_s19 + $0x78] sm:$0xff]  ;;  %v191_v4 = vld [vmem:[%s2247_s19 + $0x70] sm:$0xff] }
  0x51   : > { %2035 = vmatpush3.msra.mxu1 %v2259_v12  ;;  %2039 = vmatprep.subr.mxu0 %v182_v10  ;;  %v180_v12 = vld [vmem:[%s2247_s19 + $0x18] sm:$0xff] }
  0x52   : > { %2031 = vmatprep.mubr.msk.f32.mxu0 %vm225_vm0, %v379_v55  ;;  %v381_v0 = vadd.f32 %v374_v54, %v357_v28  ;;  %v382_v29 = vadd.f32 %v374_v54, %v358_v63  ;;  %2050 = vmatprep.subr.mxu1 %v192_v1 }
  0x53   : > { %2032 = vmatmul.mubr.msk.f32.vlgmr.msra.gmra.mxu0 %vm225_vm0, %v380_v27 }
  0x54   : > { %2036 = vmatprep.mubr.msk.f32.mxu1 %vm225_vm0, %v381_v0  ;;  %2040 = vmatpush3.msra.mxu0 %v182_v10 }
  0x55   : > { %2037 = vmatmul.mubr.msk.f32.vlgmr.msra.gmra.mxu1 %vm225_vm0, %v382_v29  ;;  %2041 = vmatprep.subr.mxu0 %v181_v30 }
  0x56   : > { %2051 = vmatpush3.msra.mxu1 %v192_v1  ;;  %2042 = vmatpush3.msra.mxu0 %v181_v30 }
  0x57   : > { %2052 = vmatprep.subr.mxu1 %v191_v4  ;;  %2043 = vmatprep.subr.mxu0 %v180_v12 }
  0x58   : > { %2053 = vmatpush3.msra.mxu1 %v191_v4  ;;  %2044 = vmatpush3.msra.mxu0 %v180_v12 }
  0x59   : > { %2054 = vmatprep.subr.mxu1 %v190_v31  ;;  %2045 = vmatprep.subr.mxu0 %v179_v32 }
  0x5a   : > { %2055 = vmatpush3.msra.mxu1 %v190_v31  ;;  %2046 = vmatpush3.msra.mxu0 %v179_v32 }
  0x5b   : > { %2056 = vmatprep.subr.mxu1 %v189_v33  ;;  %2061 = vmatprep.subr.mxu0 %v2358_v34 }
  0x5c   : > { %2057 = vmatpush3.msra.mxu1 %v189_v33 }
  0x5d   : > { %2072 = vmatprep.subr.mxu1 %v2361_v35 }
 0x10e   : > { %v2023_v36 = vpop.f32.mrf.mxu0 }
 0x10f   : > { %v709_v39 = vsel %vm707_vm1, %v2023_v36, 0.0 }
 0x110   : > { %v2028_v37 = vpop.f32.mrf.mxu1  ;;  %v455_v38 = vpop.f32.mrf.mxu0 }
 0x111   : > { %v718_v40 = vsel %vm707_vm1, %v2028_v37, 0.0  ;;  %v708_v41 = vsel %vm707_vm1, %v455_v38, 0.0 }
 0x112   : > { %v710_v42 = vadd.f32 %v709_v39, %v708_v41  ;;  %v536_v43 = vpop.f32.mrf.mxu1 }
 0x113   : > { %v717_v44 = vsel %vm707_vm1, %v536_v43, 0.0  ;;  %v2033_v45 = vpop.f32.mrf.mxu0 }
 0x114   : > { %v711_v46 = vrot.slane %v710_v42, 4  ;;  %v719_v49 = vadd.f32 %v718_v40, %v717_v44  ;;  %v727_v50 = vsel %vm707_vm1, %v2033_v45, 0.0 }
 0x115   : > { %v2038_v51 = vpop.f32.mrf.mxu1  ;;  %v617_v52 = vpop.f32.mrf.mxu0 }
 0x116   : > { %v712_v57 = vadd.f32 %v711_v46, %v710_v42  ;;  %v720_v58 = vrot.slane %v719_v49, 4  ;;  %v736_v59 = vsel %vm707_vm1, %v2038_v51, 0.0  ;;  %v726_v61 = vsel %vm707_vm1, %v617_v52, 0.0 }
 0x117   : > { %v728_v62 = vadd.f32 %v727_v50, %v726_v61  ;;  %v698_v2 = vpop.f32.mrf.mxu1 }
 0x118   : > { %v713_v3 = vrot.slane %v712_v57, 2  ;;  %v721_v5 = vadd.f32 %v720_v58, %v719_v49  ;;  %v735_v7 = vsel %vm707_vm1, %v698_v2, 0.0 }
 0x119   : > { %v729_v8 = vrot.slane %v728_v62, 4  ;;  %v737_v9 = vadd.f32 %v736_v59, %v735_v7 }
 0x11a   : > { %v714_v11 = vadd.f32 %v713_v3, %v712_v57  ;;  %v722_v13 = vrot.slane %v721_v5, 2 }
 0x11b   : > { %v730_v15 = vadd.f32 %v729_v8, %v728_v62  ;;  %v738_v16 = vrot.slane %v737_v9, 4 }
 0x11c   : > { %v715_v17 = vrot.slane %v714_v11, 1  ;;  %v723_v18 = vadd.f32 %v722_v13, %v721_v5 }
 0x11d   : > { %v731_v19 = vrot.slane %v730_v15, 2  ;;  %v739_v20 = vadd.f32 %v738_v16, %v737_v9 }
 0x11e   : > { %v716_v21 = vadd.f32 %v715_v17, %v714_v11  ;;  %v724_v22 = vrot.slane %v723_v18, 1 }
 0x11f   : > { %v732_v47 = vadd.f32 %v731_v19, %v730_v15  ;;  %v740_v48 = vrot.slane %v739_v20, 2 }
 0x120   : > { %v744_v23 = vmul.f32 0.0625, %v716_v21  ;;  %v725_v24 = vadd.f32 %v724_v22, %v723_v18 }
 0x121   : > { %v733_v25 = vrot.slane %v732_v47, 1  ;;  %v741_v26 = vadd.f32 %v740_v48, %v739_v20 }
 0x122   : > { %v2373_v54 = vsub.f32 %v455_v38, %v744_v23  ;;  %v2375_v55 = vsub.f32 %v2023_v36, %v744_v23  ;;  %v745_v27 = vmul.f32 0.0625, %v725_v24 }
 0x123   : > { %v734_v28 = vadd.f32 %v733_v25, %v732_v47  ;;  %v742_v63 = vrot.slane %v741_v26, 1 }
 0x124   : > { %v756_v0 = vmul.f32 %v2373_v54, %v2373_v54  ;;  %v757_v29 = vmul.f32 %v2375_v55, %v2375_v55  ;;  %v2381_v10 = vsub.f32 %v536_v43, %v745_v27  ;;  %v2383_v1 = vsub.f32 %v2028_v37, %v745_v27 }
 0x125   : > { %v746_v30 = vmul.f32 0.0625, %v734_v28  ;;  %v743_v4 = vadd.f32 %v742_v63, %v741_v26 }
 0x126   : > { %v764_v12 = vsel %vm707_vm1, %v756_v0, 0.0  ;;  %v765_v31 = vsel %vm707_vm1, %v757_v29, 0.0  ;;  %v758_v32 = vmul.f32 %v2381_v10, %v2381_v10  ;;  %v759_v33 = vmul.f32 %v2383_v1, %v2383_v1 }
 0x127   : > { %v766_v36 = vadd.f32 %v765_v31, %v764_v12  ;;  %v2391_v38 = vsub.f32 %v617_v52, %v746_v30  ;;  %v2393_v39 = vsub.f32 %v2033_v45, %v746_v30  ;;  %v747_v40 = vmul.f32 0.0625, %v743_v4 }
 0x128   : > { %v773_v37 = vsel %vm707_vm1, %v758_v32, 0.0  ;;  %v774_v41 = vsel %vm707_vm1, %v759_v33, 0.0  ;;  %v818_v32 = vsub.s32 2, %v2307_v53  ;;  %v842_v33 = vsub.s32 3, %v2307_v53 }
 0x129   : > { %v767_v42 = vrot.slane %v766_v36, 4  ;;  %v775_v43 = vadd.f32 %v774_v41, %v773_v37  ;;  %v760_v44 = vmul.f32 %v2391_v38, %v2391_v38  ;;  %v761_v46 = vmul.f32 %v2393_v39, %v2393_v39 }
 0x12a   : > { %v2401_v49 = vsub.f32 %v698_v2, %v747_v40  ;;  %v2403_v50 = vsub.f32 %v2038_v51, %v747_v40 }
 0x12b   : > { %v768_v52 = vadd.f32 %v767_v42, %v766_v36  ;;  %v776_v45 = vrot.slane %v775_v43, 4  ;;  %v782_v57 = vsel %vm707_vm1, %v760_v44, 0.0  ;;  %v783_v58 = vsel %vm707_vm1, %v761_v46, 0.0 }
 0x12c   : > { %v784_v59 = vadd.f32 %v783_v58, %v782_v57  ;;  %v762_v61 = vmul.f32 %v2401_v49, %v2401_v49  ;;  %v763_v62 = vmul.f32 %v2403_v50, %v2403_v50  ;;  %v843_v42 = vrot.slane %v2310_v56, %v842_v33 }
 0x12d   : > { %v769_v3 = vrot.slane %v768_v52, 2  ;;  %v777_v5 = vadd.f32 %v776_v45, %v775_v43  ;;  %v847_v57 = vrot.slane %v2315_v60, %v842_v33 }
 0x12e   : > { %v785_v7 = vrot.slane %v784_v59, 4  ;;  %v791_v2 = vsel %vm707_vm1, %v762_v61, 0.0  ;;  %v792_v51 = vsel %vm707_vm1, %v763_v62, 0.0 }
 0x12f   : > { %v770_v8 = vadd.f32 %v769_v3, %v768_v52  ;;  %v778_v9 = vrot.slane %v777_v5, 2  ;;  %v793_v11 = vadd.f32 %v792_v51, %v791_v2  ;;  %v851_v2 = vrot.slane %v2321_v6, %v842_v33 }
 0x130   : > { %v786_v13 = vadd.f32 %v785_v7, %v784_v59 }
 0x131   : > { %v771_v15 = vrot.slane %v770_v8, 1  ;;  %v779_v16 = vadd.f32 %v778_v9, %v777_v5  ;;  %v794_v17 = vrot.slane %v793_v11, 4 }
 0x132   : > { %v787_v18 = vrot.slane %v786_v13, 2 }
 0x133   : > { %v772_v19 = vadd.f32 %v771_v15, %v770_v8  ;;  %v780_v20 = vrot.slane %v779_v16, 1  ;;  %v795_v21 = vadd.f32 %v794_v17, %v793_v11 }
 0x134   : > { %v788_v22 = vadd.f32 %v787_v18, %v786_v13 }
 0x135   : > { %v800_v47 = vmul.f32 0.0625, %v772_v19  ;;  %v781_v48 = vadd.f32 %v780_v20, %v779_v16  ;;  %v796_v23 = vrot.slane %v795_v21, 2  ;;  %v201_v19 = vld [vmem:[%s2247_s19 + $0xc0] sm:$0xff] }
 0x136   : > { %v789_v24 = vrot.slane %v788_v22, 1 }
 0x137   : > { %v804_v25 = vadd.f32 1e-06, %v800_v47  ;;  %v801_v26 = vmul.f32 0.0625, %v781_v48  ;;  %v797_v27 = vadd.f32 %v796_v23, %v795_v21  ;;  %v200_v21 = vld [vmem:[%s2247_s19 + $0xb8] sm:$0xff]  ;;  %v210_v47 = vld [vmem:[%s2247_s19 + $0x108] sm:$0xff]  ;;  %v199_v48 = vld [vmem:[%s2247_s19 + $0xb0] sm:$0xff] }
 0x138   : > { %v790_v28 = vadd.f32 %v789_v24, %v788_v22  ;;  %v209_v23 = vld [vmem:[%s2247_s19 + $0x100] sm:$0xff] }
 0x139   : > { %2144 = vrsqrt.f32 %v804_v25  ;;  %v805_v63 = vadd.f32 1e-06, %v801_v26  ;;  %v798_v0 = vrot.slane %v797_v27, 1  ;;  %v186_v25 = vld [vmem:[%s2247_s19 + $0x48] sm:$0xff]  ;;  %v196_v26 = vld [vmem:[%s2247_s19 + $0x98] sm:$0xff] }
 0x13a   : > { %v802_v29 = vmul.f32 0.0625, %v790_v28  ;;  %v195_v28 = vld [vmem:[%s2247_s19 + $0x90] sm:$0xff] }
 0x13b   : > { %2146 = vrsqrt.f32 %v805_v63  ;;  %v799_v30 = vadd.f32 %v798_v0, %v797_v27  ;;  %v185_v27 = vld [vmem:[%s2247_s19 + $0x40] sm:$0xff]  ;;  %v184_v63 = vld [vmem:[%s2247_s19 + $0x38] sm:$0xff]  ;;  %v194_v0 = vld [vmem:[%s2247_s19 + $0x88] sm:$0xff] }
 0x13c   : > { %v806_v4 = vadd.f32 1e-06, %v802_v29  ;;  %v183_v29 = vld [vmem:[%s2247_s19 + $0x30] sm:$0xff] }
 0x13d   : > { %v803_v12 = vmul.f32 0.0625, %v799_v30  ;;  %v193_v30 = vld [vmem:[%s2247_s19 + $0x80] sm:$0xff] }
 0x13e   : > { %2148 = vrsqrt.f32 %v806_v4  ;;  %v2456_v4 = vld [vmem:[%s2247_s19 + $0xe8] sm:$0xff] }
 0x13f   : > { %v807_v31 = vadd.f32 1e-06, %v803_v12  ;;  %v2459_v12 = vld [vmem:[%s2247_s19 + $0x138] sm:$0xff] }
 0x141   : > { %2150 = vrsqrt.f32 %v807_v31 }
 0x146   : > { %v2145_v36 = vpop.eup %2144 }
 0x147   : > { %v812_v40 = vmul.f32 %v2145_v36, %v2310_v56 }
 0x148   : > { %v2147_v37 = vpop.eup %2146 }
 0x149   : > { %v819_v41 = vrot.slane %v812_v40, %v818_v32  ;;  %v813_v43 = vmul.f32 %v2147_v37, %v2315_v60 }
 0x14b   : > { %v2149_v44 = vpop.eup %2148  ;;  %v832_v46 = vmul.f32 %v819_v41, %v2373_v54  ;;  %v833_v52 = vmul.f32 %v819_v41, %v2375_v55  ;;  %v823_v45 = vrot.slane %v813_v43, %v818_v32 }
 0x14c   : > { %v814_v58 = vmul.f32 %v2149_v44, %v2321_v6 }
 0x14d   : > { %v856_v59 = vadd.f32 %v843_v42, %v832_v46  ;;  %v857_v61 = vadd.f32 %v843_v42, %v833_v52  ;;  %v834_v62 = vmul.f32 %v823_v45, %v2381_v10  ;;  %v835_v3 = vmul.f32 %v823_v45, %v2383_v1 }
 0x14e   : > { %v2151_v5 = vpop.eup %2150  ;;  %v827_v7 = vrot.slane %v814_v58, %v818_v32  ;;  %v855_v10 = vrot.slane %v2327_v14, %v842_v33 }
 0x14f   : > { %2152 = vtanh.f32 %v856_v59  ;;  %v858_v51 = vadd.f32 %v847_v57, %v834_v62  ;;  %v859_v54 = vadd.f32 %v847_v57, %v835_v3  ;;  %v815_v55 = vmul.f32 %v2151_v5, %v2327_v14 }
 0x150   : > { %2154 = vtanh.f32 %v857_v61  ;;  %v836_v8 = vmul.f32 %v827_v7, %v2391_v38  ;;  %v837_v9 = vmul.f32 %v827_v7, %v2393_v39 }
 0x151   : > { %2156 = vtanh.f32 %v858_v51  ;;  %v831_v11 = vrot.slane %v815_v55, %v818_v32 }
 0x152   : > { %2158 = vtanh.f32 %v859_v54  ;;  %v860_v1 = vadd.f32 %v851_v2, %v836_v8  ;;  %v861_v16 = vadd.f32 %v851_v2, %v837_v9 }
 0x153   : > { %v838_v13 = vmul.f32 %v831_v11, %v2401_v49  ;;  %v839_v15 = vmul.f32 %v831_v11, %v2403_v50  ;;  %v211_v50 = vld [vmem:[%s2247_s19 + $0x110] sm:$0xff] }
 0x154   : > { %2160 = vtanh.f32 %v860_v1 }
 0x155   : > { %v862_v17 = vadd.f32 %v855_v10, %v838_v13  ;;  %v863_v18 = vadd.f32 %v855_v10, %v839_v15 }
 0x157   : > { %2162 = vtanh.f32 %v862_v17 }
 0x158   : > { %2164 = vtanh.f32 %v861_v16 }
 0x159   : > { %2166 = vtanh.f32 %v863_v18 }
 0x15c   : > { %v2153_v38 = vpop.eup %2152 }
 0x15d   : > { %v2155_v39 = vpop.eup %2154  ;;  %2047 = vmatprep.mubr.msk.f32.mxu0 %vm707_vm1, %v2153_v38 }
 0x15e   : > { %v2157_v20 = vpop.eup %2156  ;;  %2048 = vmatmul.mubr.msk.f32.vlgmr.msra.gmra.mxu0 %vm707_vm1, %v2155_v39 }
 0x15f   : > { %v2159_v49 = vpop.eup %2158  ;;  %2058 = vmatprep.mubr.msk.f32.mxu1 %vm707_vm1, %v2157_v20  ;;  %2062 = vmatpush3.msra.mxu0 %v2358_v34 }
 0x160   : > { %2059 = vmatmul.mubr.msk.f32.vlgmr.msra.gmra.mxu1 %vm707_vm1, %v2159_v49  ;;  %2063 = vmatprep.subr.mxu0 %v201_v19 }
 0x161   : > { %v2161_v22 = vpop.eup %2160  ;;  %2073 = vmatpush3.msra.mxu1 %v2361_v35  ;;  %2064 = vmatpush3.msra.mxu0 %v201_v19 }
 0x162   : > { %2074 = vmatprep.subr.mxu1 %v211_v50  ;;  %2065 = vmatprep.subr.mxu0 %v200_v21 }
 0x163   : > { %2075 = vmatpush3.msra.mxu1 %v211_v50  ;;  %2069 = vmatprep.mubr.msk.f32.mxu0 %vm707_vm1, %v2161_v22 }
 0x164   : > { %v2163_v34 = vpop.eup %2162  ;;  %2076 = vmatprep.subr.mxu1 %v210_v47  ;;  %2066 = vmatpush3.msra.mxu0 %v200_v21 }
 0x165   : > { %2080 = vmatprep.mubr.msk.f32.mxu1 %vm707_vm1, %v2163_v34  ;;  %2077 = vmatpush3.msra.mxu1 %v210_v47  ;;  %v2165_v35 = vpop.eup %2164 }
 0x166   : > { %2067 = vmatprep.subr.mxu0 %v199_v48  ;;  %2078 = vmatprep.subr.mxu1 %v209_v23  ;;  %v2167_v24 = vpop.eup %2166 }
 0x167   : > { %2068 = vmatpush3.msra.mxu0 %v199_v48  ;;  %2079 = vmatpush3.msra.mxu1 %v209_v23 }
 0x168   : > { %2070 = vmatmul.mubr.msk.f32.vlgmr.msra.gmra.mxu0 %vm707_vm1, %v2165_v35  ;;  %2081 = vmatmul.mubr.msk.f32.vlgmr.msra.gmra.mxu1 %vm707_vm1, %v2167_v24 }
 0x169   : > { %2083 = vmatprep.subr.mxu0 %v186_v25  ;;  %2094 = vmatprep.subr.mxu1 %v196_v26 }
 0x16a   : > { %2084 = vmatpush3.msra.mxu0 %v186_v25  ;;  %2095 = vmatpush3.msra.mxu1 %v196_v26 }
 0x16b   : > { %2085 = vmatprep.subr.mxu0 %v185_v27  ;;  %2096 = vmatprep.subr.mxu1 %v195_v28 }
 0x16c   : > { %2086 = vmatpush3.msra.mxu0 %v185_v27  ;;  %2097 = vmatpush3.msra.mxu1 %v195_v28 }
 0x16d   : > { %2087 = vmatprep.subr.mxu0 %v184_v63  ;;  %2098 = vmatprep.subr.mxu1 %v194_v0 }
 0x16e   : > { %2088 = vmatpush3.msra.mxu0 %v184_v63  ;;  %2099 = vmatpush3.msra.mxu1 %v194_v0 }
 0x16f   : > { %2089 = vmatprep.subr.mxu0 %v183_v29  ;;  %2100 = vmatprep.subr.mxu1 %v193_v30 }
 0x170   : > { %2090 = vmatpush3.msra.mxu0 %v183_v29  ;;  %2101 = vmatpush3.msra.mxu1 %v193_v30 }
 0x171   : > { %2105 = vmatprep.subr.mxu0 %v2456_v4  ;;  %2116 = vmatprep.subr.mxu1 %v2459_v12 }
 0x21e   : > { %v2049_v31 = vpop.f32.mrf.mxu0 }
 0x21f   : > { %v1197_v36 = vsel %vm707_vm1, %v2049_v31, 0.0 }
 0x220   : > { %v2060_v32 = vpop.f32.mrf.mxu1  ;;  %v944_v33 = vpop.f32.mrf.mxu0 }
 0x221   : > { %v1196_v40 = vsel %vm707_vm1, %v944_v33, 0.0  ;;  %v1206_v42 = vsel %vm707_vm1, %v2060_v32, 0.0 }
 0x222   : > { %v1198_v37 = vadd.f32 %v1197_v36, %v1196_v40  ;;  %v1025_v41 = vpop.f32.mrf.mxu1 }
 0x223   : > { %v1205_v43 = vsel %vm707_vm1, %v1025_v41, 0.0 }
 0x224   : > { %v1199_v44 = vrot.slane %v1198_v37, 4  ;;  %v1207_v46 = vadd.f32 %v1206_v42, %v1205_v43 }
 0x226   : > { %v1200_v52 = vadd.f32 %v1199_v44, %v1198_v37  ;;  %v1208_v45 = vrot.slane %v1207_v46, 4 }
 0x228   : > { %v1201_v57 = vrot.slane %v1200_v52, 2  ;;  %v1209_v58 = vadd.f32 %v1208_v45, %v1207_v46  ;;  %v2071_v59 = vpop.f32.mrf.mxu0  ;;  %v2082_v61 = vpop.f32.mrf.mxu1 }
 0x229   : > { %v1215_v2 = vsel %vm707_vm1, %v2071_v59, 0.0  ;;  %v1224_v51 = vsel %vm707_vm1, %v2082_v61, 0.0 }
 0x22a   : > { %v1202_v62 = vadd.f32 %v1201_v57, %v1200_v52  ;;  %v1210_v3 = vrot.slane %v1209_v58, 2  ;;  %v1106_v5 = vpop.f32.mrf.mxu0  ;;  %v1187_v7 = vpop.f32.mrf.mxu1 }
 0x22b   : > { %v1214_v54 = vsel %vm707_vm1, %v1106_v5, 0.0  ;;  %v1223_v55 = vsel %vm707_vm1, %v1187_v7, 0.0 }
 0x22c   : > { %v1203_v8 = vrot.slane %v1202_v62, 1  ;;  %v1211_v9 = vadd.f32 %v1210_v3, %v1209_v58  ;;  %v1216_v11 = vadd.f32 %v1215_v2, %v1214_v54  ;;  %v1225_v10 = vadd.f32 %v1224_v51, %v1223_v55 }
 0x22e   : > { %v1204_v1 = vadd.f32 %v1203_v8, %v1202_v62  ;;  %v1212_v13 = vrot.slane %v1211_v9, 1  ;;  %v1217_v15 = vrot.slane %v1216_v11, 4  ;;  %v1226_v16 = vrot.slane %v1225_v10, 4 }
 0x230   : > { %v1232_v17 = vmul.f32 0.0625, %v1204_v1  ;;  %v1213_v18 = vadd.f32 %v1212_v13, %v1211_v9  ;;  %v1218_v38 = vadd.f32 %v1217_v15, %v1216_v11  ;;  %v1227_v39 = vadd.f32 %v1226_v16, %v1225_v10 }
 0x232   : > { %v2471_v19 = vsub.f32 %v944_v33, %v1232_v17  ;;  %v2473_v20 = vsub.f32 %v2049_v31, %v1232_v17  ;;  %v1233_v49 = vmul.f32 0.0625, %v1213_v18  ;;  %v1219_v50 = vrot.slane %v1218_v38, 2 }
 0x233   : > { %v1228_v21 = vrot.slane %v1227_v39, 2 }
 0x234   : > { %v1244_v22 = vmul.f32 %v2471_v19, %v2471_v19  ;;  %v1245_v47 = vmul.f32 %v2473_v20, %v2473_v20  ;;  %v2479_v48 = vsub.f32 %v1025_v41, %v1233_v49  ;;  %v2481_v23 = vsub.f32 %v2060_v32, %v1233_v49 }
 0x235   : > { %v1220_v34 = vadd.f32 %v1219_v50, %v1218_v38  ;;  %v1229_v35 = vadd.f32 %v1228_v21, %v1227_v39 }
 0x236   : > { %v1252_v24 = vsel %vm707_vm1, %v1244_v22, 0.0  ;;  %v1253_v25 = vsel %vm707_vm1, %v1245_v47, 0.0  ;;  %v1246_v26 = vmul.f32 %v2479_v48, %v2479_v48  ;;  %v1247_v27 = vmul.f32 %v2481_v23, %v2481_v23 }
 0x237   : > { %v1254_v28 = vadd.f32 %v1253_v25, %v1252_v24  ;;  %v1221_v63 = vrot.slane %v1220_v34, 1  ;;  %v1230_v0 = vrot.slane %v1229_v35, 1 }
 0x238   : > { %v1261_v29 = vsel %vm707_vm1, %v1246_v26, 0.0  ;;  %v1262_v30 = vsel %vm707_vm1, %v1247_v27, 0.0 }
 0x239   : > { %v1255_v31 = vrot.slane %v1254_v28, 4  ;;  %v1263_v32 = vadd.f32 %v1262_v30, %v1261_v29  ;;  %v1222_v33 = vadd.f32 %v1221_v63, %v1220_v34  ;;  %v1231_v36 = vadd.f32 %v1230_v0, %v1229_v35 }
 0x23a   : > { %v1306_v29 = vsub.s32 4, %v2307_v53  ;;  %v1330_v30 = vsub.s32 5, %v2307_v53 }
 0x23b   : > { %v1256_v40 = vadd.f32 %v1255_v31, %v1254_v28  ;;  %v1264_v37 = vrot.slane %v1263_v32, 4  ;;  %v1234_v41 = vmul.f32 0.0625, %v1222_v33  ;;  %v1235_v42 = vmul.f32 0.0625, %v1231_v36 }
 0x23d   : > { %v1257_v43 = vrot.slane %v1256_v40, 2  ;;  %v1265_v44 = vadd.f32 %v1264_v37, %v1263_v32  ;;  %v2491_v46 = vsub.f32 %v1106_v5, %v1234_v41  ;;  %v2493_v52 = vsub.f32 %v2071_v59, %v1234_v41 }
 0x23e   : > { %v2495_v45 = vsub.f32 %v1187_v7, %v1235_v42  ;;  %v2497_v57 = vsub.f32 %v2082_v61, %v1235_v42 }
 0x23f   : > { %v1258_v58 = vadd.f32 %v1257_v43, %v1256_v40  ;;  %v1266_v62 = vrot.slane %v1265_v44, 2  ;;  %v1248_v3 = vmul.f32 %v2491_v46, %v2491_v46  ;;  %v1249_v2 = vmul.f32 %v2493_v52, %v2493_v52 }
 0x240   : > { %v1250_v51 = vmul.f32 %v2495_v45, %v2495_v45  ;;  %v1251_v5 = vmul.f32 %v2497_v57, %v2497_v57  ;;  %v1331_v40 = vrot.slane %v2310_v56, %v1330_v30 }
 0x241   : > { %v1259_v59 = vrot.slane %v1258_v58, 1  ;;  %v1267_v54 = vadd.f32 %v1266_v62, %v1265_v44  ;;  %v1270_v7 = vsel %vm707_vm1, %v1248_v3, 0.0  ;;  %v1271_v61 = vsel %vm707_vm1, %v1249_v2, 0.0 }
 0x242   : > { %v1272_v55 = vadd.f32 %v1271_v61, %v1270_v7  ;;  %v1279_v8 = vsel %vm707_vm1, %v1250_v51, 0.0  ;;  %v1280_v9 = vsel %vm707_vm1, %v1251_v5, 0.0  ;;  %v1335_v44 = vrot.slane %v2315_v60, %v1330_v30 }
 0x243   : > { %v1260_v11 = vadd.f32 %v1259_v59, %v1258_v58  ;;  %v1268_v10 = vrot.slane %v1267_v54, 1  ;;  %v1281_v1 = vadd.f32 %v1280_v9, %v1279_v8 }
 0x244   : > { %v1273_v13 = vrot.slane %v1272_v55, 4 }
 0x245   : > { %v1288_v15 = vmul.f32 0.0625, %v1260_v11  ;;  %v1269_v16 = vadd.f32 %v1268_v10, %v1267_v54  ;;  %v1282_v17 = vrot.slane %v1281_v1, 4 }
 0x246   : > { %v1274_v18 = vadd.f32 %v1273_v13, %v1272_v55  ;;  %v204_v13 = vld [vmem:[%s2247_s19 + $0xd8] sm:$0xff] }
 0x247   : > { %v1292_v38 = vadd.f32 1e-06, %v1288_v15  ;;  %v1289_v39 = vmul.f32 0.0625, %v1269_v16  ;;  %v1283_v49 = vadd.f32 %v1282_v17, %v1281_v1  ;;  %v214_v15 = vld [vmem:[%s2247_s19 + $0x128] sm:$0xff]  ;;  %v203_v16 = vld [vmem:[%s2247_s19 + $0xd0] sm:$0xff]  ;;  %v213_v17 = vld [vmem:[%s2247_s19 + $0x120] sm:$0xff] }
 0x248   : > { %v1275_v50 = vrot.slane %v1274_v18, 2 }
 0x249   : > { %2168 = vrsqrt.f32 %v1292_v38  ;;  %v1293_v21 = vadd.f32 1e-06, %v1289_v39  ;;  %v1284_v22 = vrot.slane %v1283_v49, 2 }
 0x24a   : > { %v1276_v47 = vadd.f32 %v1275_v50, %v1274_v18 }
 0x24b   : > { %2170 = vrsqrt.f32 %v1293_v21  ;;  %v1285_v34 = vadd.f32 %v1284_v22, %v1283_v49 }
 0x24c   : > { %v1277_v35 = vrot.slane %v1276_v47, 1 }
 0x24d   : > { %v1286_v24 = vrot.slane %v1285_v34, 1 }
 0x24e   : > { %v1278_v25 = vadd.f32 %v1277_v35, %v1276_v47 }
 0x24f   : > { %v1287_v26 = vadd.f32 %v1286_v24, %v1285_v34 }
 0x250   : > { %v1290_v27 = vmul.f32 0.0625, %v1278_v25 }
 0x251   : > { %v1291_v28 = vmul.f32 0.0625, %v1287_v26 }
 0x252   : > { %v1294_v63 = vadd.f32 1e-06, %v1290_v27 }
 0x253   : > { %v1295_v0 = vadd.f32 1e-06, %v1291_v28 }
 0x254   : > { %2172 = vrsqrt.f32 %v1294_v63 }
 0x255   : > { %2174 = vrsqrt.f32 %v1295_v0 }
 0x256   : > { %v2169_v31 = vpop.eup %2168 }
 0x257   : > { %v1300_v32 = vmul.f32 %v2169_v31, %v2310_v56 }
 0x258   : > { %v2171_v33 = vpop.eup %2170 }
 0x259   : > { %v1307_v36 = vrot.slane %v1300_v32, %v1306_v29  ;;  %v1301_v37 = vmul.f32 %v2171_v33, %v2315_v60  ;;  %v1339_v60 = vrot.slane %v2321_v6, %v1330_v30 }
 0x25b   : > { %v1320_v41 = vmul.f32 %v1307_v36, %v2471_v19  ;;  %v1321_v42 = vmul.f32 %v1307_v36, %v2473_v20  ;;  %v1311_v43 = vrot.slane %v1301_v37, %v1306_v29 }
 0x25d   : > { %v1344_v58 = vadd.f32 %v1331_v40, %v1320_v41  ;;  %v1345_v62 = vadd.f32 %v1331_v40, %v1321_v42  ;;  %v1322_v3 = vmul.f32 %v1311_v43, %v2479_v48  ;;  %v1323_v2 = vmul.f32 %v1311_v43, %v2481_v23 }
 0x25e   : > { %v1343_v48 = vrot.slane %v2327_v14, %v1330_v30 }
 0x25f   : > { %2176 = vtanh.f32 %v1344_v58  ;;  %v1346_v51 = vadd.f32 %v1335_v44, %v1322_v3  ;;  %v1347_v5 = vadd.f32 %v1335_v44, %v1323_v2 }
 0x260   : > { %2178 = vtanh.f32 %v1345_v62 }
 0x261   : > { %v2173_v56 = vpop.eup %2172  ;;  %2180 = vtanh.f32 %v1346_v51 }
 0x262   : > { %v2175_v59 = vpop.eup %2174  ;;  %2182 = vtanh.f32 %v1347_v5  ;;  %v1302_v19 = vmul.f32 %v2173_v56, %v2321_v6 }
 0x263   : > { %v1303_v20 = vmul.f32 %v2175_v59, %v2327_v14 }
 0x264   : > { %v1315_v54 = vrot.slane %v1302_v19, %v1306_v29 }
 0x265   : > { %v1319_v7 = vrot.slane %v1303_v20, %v1306_v29 }
 0x266   : > { %v1324_v23 = vmul.f32 %v1315_v54, %v2491_v46  ;;  %v1325_v61 = vmul.f32 %v1315_v54, %v2493_v52  ;;  %v205_v46 = vld [vmem:[%s2247_s19 + $0xe0] sm:$0xff] }
 0x267   : > { %v1326_v55 = vmul.f32 %v1319_v7, %v2495_v45  ;;  %v1327_v8 = vmul.f32 %v1319_v7, %v2497_v57  ;;  %v215_v57 = vld [vmem:[%s2247_s19 + $0x130] sm:$0xff] }
 0x268   : > { %v1348_v9 = vadd.f32 %v1339_v60, %v1324_v23  ;;  %v1349_v11 = vadd.f32 %v1339_v60, %v1325_v61 }
 0x269   : > { %v1350_v10 = vadd.f32 %v1343_v48, %v1326_v55  ;;  %v1351_v1 = vadd.f32 %v1343_v48, %v1327_v8 }
 0x26a   : > { %2184 = vtanh.f32 %v1348_v9 }
 0x26b   : > { %2186 = vtanh.f32 %v1349_v11 }
 0x26c   : > { %v2177_v6 = vpop.eup %2176  ;;  %2188 = vtanh.f32 %v1350_v10 }
 0x26d   : > { %v2179_v14 = vpop.eup %2178  ;;  %2190 = vtanh.f32 %v1351_v1  ;;  %2091 = vmatprep.mubr.msk.f32.mxu0 %vm707_vm1, %v2177_v6 }
 0x26e   : > { %v2181_v52 = vpop.eup %2180  ;;  %2092 = vmatmul.mubr.msk.f32.vlgmr.msra.gmra.mxu0 %vm707_vm1, %v2179_v14 }
 0x26f   : > { %v2183_v45 = vpop.eup %2182  ;;  %2102 = vmatprep.mubr.msk.f32.mxu1 %vm707_vm1, %v2181_v52  ;;  %2106 = vmatpush3.msra.mxu0 %v2456_v4 }
 0x270   : > { %2103 = vmatmul.mubr.msk.f32.vlgmr.msra.gmra.mxu1 %vm707_vm1, %v2183_v45  ;;  %2107 = vmatprep.subr.mxu0 %v205_v46 }
 0x271   : > { %2117 = vmatpush3.msra.mxu1 %v2459_v12  ;;  %2108 = vmatpush3.msra.mxu0 %v205_v46 }
 0x272   : > { %2118 = vmatprep.subr.mxu1 %v215_v57  ;;  %2109 = vmatprep.subr.mxu0 %v204_v13 }
 0x273   : > { %2119 = vmatpush3.msra.mxu1 %v215_v57  ;;  %2110 = vmatpush3.msra.mxu0 %v204_v13 }
 0x274   : > { %2120 = vmatprep.subr.mxu1 %v214_v15  ;;  %2111 = vmatprep.subr.mxu0 %v203_v16 }
 0x275   : > { %2121 = vmatpush3.msra.mxu1 %v214_v15  ;;  %2112 = vmatpush3.msra.mxu0 %v203_v16 }
 0x276   : > { %2122 = vmatprep.subr.mxu1 %v213_v17 }
 0x277   : > { %v2185_v4 = vpop.eup %2184  ;;  %2123 = vmatpush3.msra.mxu1 %v213_v17 }
 0x278   : > { %v2187_v18 = vpop.eup %2186  ;;  %2113 = vmatprep.mubr.msk.f32.mxu0 %vm707_vm1, %v2185_v4 }
 0x279   : > { %v2189_v38 = vpop.eup %2188  ;;  %2114 = vmatmul.mubr.msk.f32.vlgmr.msra.gmra.mxu0 %vm707_vm1, %v2187_v18 }
 0x27a   : > { %v2191_v12 = vpop.eup %2190  ;;  %2124 = vmatprep.mubr.msk.f32.mxu1 %vm707_vm1, %v2189_v38 }
 0x27b   : > { %2125 = vmatmul.mubr.msk.f32.vlgmr.msra.gmra.mxu1 %vm707_vm1, %v2191_v12 }
 0x32e   : > { %v2093_v39 = vpop.f32.mrf.mxu0 }
 0x32f   : > { %v1685_v21 = vsel %vm225_vm0, %v2093_v39, 0.0 }
 0x330   : > { %v2104_v49 = vpop.f32.mrf.mxu1  ;;  %v1432_v50 = vpop.f32.mrf.mxu0 }
 0x331   : > { %v1684_v22 = vsel %vm225_vm0, %v1432_v50, 0.0  ;;  %v1694_v35 = vsel %vm225_vm0, %v2104_v49, 0.0 }
 0x332   : > { %v1686_v47 = vadd.f32 %v1685_v21, %v1684_v22  ;;  %v1513_v34 = vpop.f32.mrf.mxu1 }
 0x333   : > { %v1693_v24 = vsel %vm225_vm0, %v1513_v34, 0.0 }
 0x334   : > { %v1687_v25 = vrot.slane %v1686_v47, 4  ;;  %v1695_v26 = vadd.f32 %v1694_v35, %v1693_v24 }
 0x336   : > { %v1688_v27 = vadd.f32 %v1687_v25, %v1686_v47  ;;  %v1696_v28 = vrot.slane %v1695_v26, 4 }
 0x338   : > { %v1689_v63 = vrot.slane %v1688_v27, 2  ;;  %v1697_v0 = vadd.f32 %v1696_v28, %v1695_v26 }
 0x339   : > { %v2115_v29 = vpop.f32.mrf.mxu0 }
 0x33a   : > { %v1690_v30 = vadd.f32 %v1689_v63, %v1688_v27  ;;  %v1698_v31 = vrot.slane %v1697_v0, 2  ;;  %v1703_v37 = vsel %vm225_vm0, %v2115_v29, 0.0 }
 0x33b   : > { %v2126_v32 = vpop.f32.mrf.mxu1  ;;  %v1594_v33 = vpop.f32.mrf.mxu0 }
 0x33c   : > { %v1691_v36 = vrot.slane %v1690_v30, 1  ;;  %v1699_v40 = vadd.f32 %v1698_v31, %v1697_v0  ;;  %v1702_v41 = vsel %vm225_vm0, %v1594_v33, 0.0  ;;  %v1712_v62 = vsel %vm225_vm0, %v2126_v32, 0.0 }
 0x33d   : > { %v1704_v42 = vadd.f32 %v1703_v37, %v1702_v41  ;;  %v1675_v43 = vpop.f32.mrf.mxu1 }
 0x33e   : > { %v1692_v44 = vadd.f32 %v1691_v36, %v1690_v30  ;;  %v1700_v58 = vrot.slane %v1699_v40, 1  ;;  %v1711_v3 = vsel %vm225_vm0, %v1675_v43, 0.0 }
 0x33f   : > { %v1705_v2 = vrot.slane %v1704_v42, 4  ;;  %v1713_v51 = vadd.f32 %v1712_v62, %v1711_v3 }
 0x340   : > { %v1720_v5 = vmul.f32 0.0625, %v1692_v44  ;;  %v1701_v56 = vadd.f32 %v1700_v58, %v1699_v40 }
 0x341   : > { %v1706_v59 = vadd.f32 %v1705_v2, %v1704_v42  ;;  %v1714_v19 = vrot.slane %v1713_v51, 4 }
 0x342   : > { %v2553_v20 = vsub.f32 %v1432_v50, %v1720_v5  ;;  %v2555_v54 = vsub.f32 %v2093_v39, %v1720_v5  ;;  %v1721_v60 = vmul.f32 0.0625, %v1701_v56 }
 0x343   : > { %v1707_v7 = vrot.slane %v1706_v59, 2  ;;  %v1715_v48 = vadd.f32 %v1714_v19, %v1713_v51 }
 0x344   : > { %v1732_v23 = vmul.f32 %v2553_v20, %v2553_v20  ;;  %v1733_v61 = vmul.f32 %v2555_v54, %v2555_v54  ;;  %v2561_v55 = vsub.f32 %v1513_v34, %v1721_v60  ;;  %v2563_v8 = vsub.f32 %v2104_v49, %v1721_v60 }
 0x345   : > { %v1708_v9 = vadd.f32 %v1707_v7, %v1706_v59  ;;  %v1716_v11 = vrot.slane %v1715_v48, 2 }
 0x346   : > { %v1740_v10 = vsel %vm225_vm0, %v1732_v23, 0.0  ;;  %v1741_v1 = vsel %vm225_vm0, %v1733_v61, 0.0  ;;  %v1734_v6 = vmul.f32 %v2561_v55, %v2561_v55  ;;  %v1735_v14 = vmul.f32 %v2563_v8, %v2563_v8 }
 0x347   : > { %v1742_v46 = vadd.f32 %v1741_v1, %v1740_v10  ;;  %v1709_v52 = vrot.slane %v1708_v9, 1  ;;  %v1717_v45 = vadd.f32 %v1716_v11, %v1715_v48  ;;  %v1794_v1 = vsub.s32 6, %v2307_v53 }
 0x348   : > { %v1749_v57 = vsel %vm225_vm0, %v1734_v6, 0.0  ;;  %v1750_v13 = vsel %vm225_vm0, %v1735_v14, 0.0  ;;  %v1818_v6 = vsub.s32 7, %v2307_v53 }
 0x349   : > { %v1743_v15 = vrot.slane %v1742_v46, 4  ;;  %v1751_v16 = vadd.f32 %v1750_v13, %v1749_v57  ;;  %v1710_v17 = vadd.f32 %v1709_v52, %v1708_v9  ;;  %v1718_v4 = vrot.slane %v1717_v45, 1  ;;  %v2200_v52 = vld [vmem:[%s2247_s19] sm:$0xff] }
 0x34b   : > { %v1744_v18 = vadd.f32 %v1743_v15, %v1742_v46  ;;  %v1752_v38 = vrot.slane %v1751_v16, 4  ;;  %v1722_v12 = vmul.f32 0.0625, %v1710_v17  ;;  %v1719_v39 = vadd.f32 %v1718_v4, %v1717_v45 }
 0x34c   : > { %v1819_v15 = vrot.slane %v2200_v52, %v1818_v6 }
 0x34d   : > { %v1745_v49 = vrot.slane %v1744_v18, 2  ;;  %v1753_v50 = vadd.f32 %v1752_v38, %v1751_v16  ;;  %v2573_v21 = vsub.f32 %v1594_v33, %v1722_v12  ;;  %v2575_v22 = vsub.f32 %v2115_v29, %v1722_v12  ;;  %v2201_v16 = vld [vmem:[%s2247_s19 + $0x50] sm:$0xff] }
 0x34e   : > { %v1723_v47 = vmul.f32 0.0625, %v1719_v39  ;;  %v1823_v12 = vrot.slane %v2201_v16, %v1818_v6 }
 0x34f   : > { %v1746_v34 = vadd.f32 %v1745_v49, %v1744_v18  ;;  %v1754_v35 = vrot.slane %v1753_v50, 2  ;;  %v1736_v24 = vmul.f32 %v2573_v21, %v2573_v21  ;;  %v1737_v25 = vmul.f32 %v2575_v22, %v2575_v22 }
 0x350   : > { %v2581_v26 = vsub.f32 %v1675_v43, %v1723_v47  ;;  %v2583_v27 = vsub.f32 %v2126_v32, %v1723_v47 }
 0x351   : > { %v1747_v28 = vrot.slane %v1746_v34, 1  ;;  %v1755_v63 = vadd.f32 %v1754_v35, %v1753_v50  ;;  %v1758_v0 = vsel %vm225_vm0, %v1736_v24, 0.0  ;;  %v1759_v29 = vsel %vm225_vm0, %v1737_v25, 0.0 }
 0x352   : > { %v1760_v30 = vadd.f32 %v1759_v29, %v1758_v0  ;;  %v1738_v31 = vmul.f32 %v2581_v26, %v2581_v26  ;;  %v1739_v33 = vmul.f32 %v2583_v27, %v2583_v27 }
 0x353   : > { %v1748_v36 = vadd.f32 %v1747_v28, %v1746_v34  ;;  %v1756_v40 = vrot.slane %v1755_v63, 1  ;;  %v2202_v34 = vld [vmem:[%s2247_s19 + $0xa0] sm:$0xff] }
 0x354   : > { %v1761_v37 = vrot.slane %v1760_v30, 4  ;;  %v1767_v41 = vsel %vm225_vm0, %v1738_v31, 0.0  ;;  %v1768_v32 = vsel %vm225_vm0, %v1739_v33, 0.0 }
 0x355   : > { %v1776_v42 = vmul.f32 0.0625, %v1748_v36  ;;  %v1757_v43 = vadd.f32 %v1756_v40, %v1755_v63  ;;  %v1769_v44 = vadd.f32 %v1768_v32, %v1767_v41 }
 0x356   : > { %v1762_v58 = vadd.f32 %v1761_v37, %v1760_v30 }
 0x357   : > { %v1780_v62 = vadd.f32 1e-06, %v1776_v42  ;;  %v1777_v3 = vmul.f32 0.0625, %v1757_v43  ;;  %v1770_v2 = vrot.slane %v1769_v44, 4 }
 0x358   : > { %v1763_v51 = vrot.slane %v1762_v58, 2 }
 0x359   : > { %2192 = vrsqrt.f32 %v1780_v62  ;;  %v1781_v5 = vadd.f32 1e-06, %v1777_v3  ;;  %v1771_v56 = vadd.f32 %v1770_v2, %v1769_v44 }
 0x35a   : > { %v1764_v59 = vadd.f32 %v1763_v51, %v1762_v58 }
 0x35b   : > { %2194 = vrsqrt.f32 %v1781_v5  ;;  %v1772_v19 = vrot.slane %v1771_v56, 2 }
 0x35c   : > { %v1765_v60 = vrot.slane %v1764_v59, 1 }
 0x35d   : > { %v1773_v7 = vadd.f32 %v1772_v19, %v1771_v56 }
 0x35e   : > { %v1766_v48 = vadd.f32 %v1765_v60, %v1764_v59 }
 0x35f   : > { %v1774_v23 = vrot.slane %v1773_v7, 1 }
 0x360   : > { %v1778_v61 = vmul.f32 0.0625, %v1766_v48 }
 0x361   : > { %v1775_v9 = vadd.f32 %v1774_v23, %v1773_v7 }
 0x362   : > { %v1782_v11 = vadd.f32 1e-06, %v1778_v61 }
 0x363   : > { %v1779_v10 = vmul.f32 0.0625, %v1775_v9 }
 0x364   : > { %2196 = vrsqrt.f32 %v1782_v11 }
 0x365   : > { %v1783_v14 = vadd.f32 1e-06, %v1779_v10 }
 0x366   : > { %v2193_v46 = vpop.eup %2192 }
 0x367   : > { %v1788_v45 = vmul.f32 %v2200_v52, %v2193_v46  ;;  %2198 = vrsqrt.f32 %v1783_v14 }
 0x368   : > { %v2195_v57 = vpop.eup %2194 }
 0x369   : > { %v1795_v13 = vrot.slane %v1788_v45, %v1794_v1  ;;  %v1789_v17 = vmul.f32 %v2201_v16, %v2195_v57 }
 0x36b   : > { %v1808_v4 = vmul.f32 %v1795_v13, %v2553_v20  ;;  %v1809_v18 = vmul.f32 %v1795_v13, %v2555_v54  ;;  %v1799_v38 = vrot.slane %v1789_v17, %v1794_v1 }
 0x36d   : > { %v1832_v53 = vadd.f32 %v1819_v15, %v1808_v4  ;;  %v1833_v39 = vadd.f32 %v1819_v15, %v1809_v18  ;;  %v1810_v20 = vmul.f32 %v1799_v38, %v2561_v55  ;;  %v1811_v49 = vmul.f32 %v1799_v38, %v2563_v8  ;;  %v2203_v8 = vld [vmem:[%s2247_s19 + $0xf0] sm:$0xff] }
 0x36e   : > { %v1827_v55 = vrot.slane %v2202_v34, %v1818_v6  ;;  %v1831_v30 = vrot.slane %v2203_v8, %v1818_v6 }
 0x36f   : > { %1840 = vst.msk [vmem:[%s2604_s22] sm:$0xff] %vm225_vm0, %v1832_v53  ;;  %1841 = vst.msk [vmem:[%s2604_s22 + $0x8] sm:$0xff] %vm225_vm0, %v1833_v39  ;;  %v1834_v54 = vadd.f32 %v1823_v12, %v1810_v20  ;;  %v1835_v50 = vadd.f32 %v1823_v12, %v1811_v49 }
 0x371   : > { %v2197_v47 = vpop.eup %2196  ;;  %1842 = vst.msk [vmem:[%s2604_s22 + $0x10] sm:$0xff] %vm225_vm0, %v1834_v54  ;;  %1843 = vst.msk [vmem:[%s2604_s22 + $0x18] sm:$0xff] %vm225_vm0, %v1835_v50 }
 0x372   : > { %v1790_v35 = vmul.f32 %v2202_v34, %v2197_v47 }
 0x374   : > { %v2199_v24 = vpop.eup %2198  ;;  %v1803_v25 = vrot.slane %v1790_v35, %v1794_v1 }
 0x375   : > { %v1791_v28 = vmul.f32 %v2203_v8, %v2199_v24 }
 0x376   : > { %v1812_v63 = vmul.f32 %v1803_v25, %v2573_v21  ;;  %v1813_v0 = vmul.f32 %v1803_v25, %v2575_v22 }
 0x377   : > { %v1807_v29 = vrot.slane %v1791_v28, %v1794_v1 }
 0x378   : > { %v1836_v31 = vadd.f32 %v1827_v55, %v1812_v63  ;;  %v1837_v33 = vadd.f32 %v1827_v55, %v1813_v0 }
 0x379   : > { %v1814_v36 = vmul.f32 %v1807_v29, %v2581_v26  ;;  %v1815_v40 = vmul.f32 %v1807_v29, %v2583_v27 }
 0x37a   : > { %1844 = vst.msk [vmem:[%s2604_s22 + $0x20] sm:$0xff] %vm225_vm0, %v1836_v31  ;;  %1845 = vst.msk [vmem:[%s2604_s22 + $0x28] sm:$0xff] %vm225_vm0, %v1837_v33 }
 0x37b   : > { %v1838_v37 = vadd.f32 %v1831_v30, %v1814_v36  ;;  %v1839_v41 = vadd.f32 %v1831_v30, %v1815_v40 }
 0x37d   : > { %1846 = vst.msk [vmem:[%s2604_s22 + $0x30] sm:$0xff] %vm225_vm0, %v1838_v37  ;;  %1847 = vst.msk [vmem:[%s2604_s22 + $0x38] sm:$0xff] %vm225_vm0, %v1839_v41 }
 0x37e PF: > { %s12_s9 = sadd.s32 1, %s2210_s9  }
 0x37f   : > { %p9_p4 = scmp.ge.s32.totalorder %s12_s9, 4  }
 0x381   :  { %11 = sbr.rel (!%p9_p4) target bundleno = 1 (0x1), region = 61 }

</bundles_post_ra>
